<compile_context>
chip_gen: v7x
topology: tpu7x:2x2x1
jax: 0.10.0
libtpu: 0.0.40
codegen_flags: <defaults>
</compile_context>

<pallas_src>
import functools

import jax
import jax.numpy as jnp
from jax.experimental import pallas as pl
from jax.experimental.pallas import tpu as pltpu

LANES = 128
TILE_ROWS = 2048     # 2048 x 128 f32 = 1 MiB per input per grid step
MAX_CORES = 2        # megacore split on multi-TC chips; harmless elsewhere


def _iou_kernel(x_ref, t_ref, inter_ref, total_ref, *,
                rows, tiles_per_core, tile_rows, needs_mask):
    c = pl.program_id(0)   # core-parallel axis
    i = pl.program_id(1)   # serial reduction axis

    @pl.when(i == 0)
    def _init():
        inter_ref[...] = jnp.zeros_like(inter_ref)
        total_ref[...] = jnp.zeros_like(total_ref)

    x = x_ref[...].astype(jnp.float32)
    t = t_ref[...].astype(jnp.float32)
    # sigmoid(x) == 0.5 * (tanh(0.5 * x) + 1): single EUP op per vreg.
    s = 0.5 * (jnp.tanh(0.5 * x) + 1.0)
    inter_t = s * t
    total_t = s + t

    def tree(v):
        # (tile_rows, 128) -> (8, 128): tile-boundary-preserving reshape,
        # then VPU adds over the leading axis (no XLU, no big accumulator).
        return v.reshape(tile_rows // 8, 8, LANES).sum(axis=0)

    if needs_mask:
        # rem_rows >= tile_rows -> full tile (no mask)
        # 0 < rem_rows < tile_rows -> partial last tile (row mask)
        # rem_rows <= 0 -> clamped duplicate tile (contributes nothing)
        b = c * tiles_per_core + i
        rem_rows = rows - b * tile_rows

        @pl.when(rem_rows >= tile_rows)
        def _full():
            inter_ref[0] += tree(inter_t)
            total_ref[0] += tree(total_t)

        @pl.when(rem_rows < tile_rows)
        def _edge():
            row_ids = jax.lax.broadcasted_iota(
                jnp.int32, (tile_rows, LANES), 0)
            m = row_ids < rem_rows
            # Keep the select (not arithmetic masking): out-of-bounds rows may
            # hold garbage whose tanh is NaN/Inf; select discards it safely.
            inter_ref[0] += tree(jnp.where(m, inter_t, 0.0))
            total_ref[0] += tree(jnp.where(m, total_t, 0.0))
    else:
        inter_ref[0] += tree(inter_t)
        total_ref[0] += tree(total_t)


def _partial_sums_jnp(x, t):
    """Plain-JAX sigmoid/sum for the tiny remainder (tail or tiny inputs)."""
    s = jax.nn.sigmoid(x.astype(jnp.float32))
    tf = t.astype(jnp.float32)
    return jnp.sum(s * tf), jnp.sum(s + tf)


def iou_loss(inputs, targets, smooth=1.0):
    """Pallas TPU implementation of IoULoss.forward."""
    x = jnp.ravel(inputs)
    t = jnp.ravel(targets)
    n = int(x.shape[0])
    if n == 0:
        # intersection = total = 0 -> IoU = smooth / smooth = 1 -> loss 0.
        return jnp.float32(0.0)

    rows = n // LANES
    use_kernel = rows >= 8
    n_kernel = rows * LANES if use_kernel else 0

    inter = jnp.float32(0.0)
    total = jnp.float32(0.0)

    if n_kernel < n:
        # Non-lane-aligned tail (<=127 elems), or the whole input if tiny:
        # O(1K) elements of plain jnp.  No full-array copy / pad.
        ti, tt = _partial_sums_jnp(x[n_kernel:], t[n_kernel:])
        inter = inter + ti
        total = total + tt

    if use_kernel:
        x2 = x[:n_kernel].reshape(rows, LANES)   # no copy when n is lane-aligned
        t2 = t[:n_kernel].reshape(rows, LANES)

        # tile_rows is a multiple of 8 and never exceeds rows.
        tile_rows = min(TILE_ROWS, (rows // 8) * 8)
        num_tiles = pl.cdiv(rows, tile_rows)
        num_cores = min(MAX_CORES, num_tiles)
        tiles_per_core = pl.cdiv(num_tiles, num_cores)
        needs_mask = (rows % tile_rows != 0) or (
            num_cores * tiles_per_core != num_tiles)

        def in_index_map(c, i):
            b = c * tiles_per_core + i
            # Clamp overshooting block indices (ragged core split); their
            # contributions are zeroed by the in-kernel row mask.
            return (jnp.minimum(b, num_tiles - 1), 0)

        def out_index_map(c, i):
            return (c, 0, 0)

        kernel = functools.partial(
            _iou_kernel, rows=rows, tiles_per_core=tiles_per_core,
            tile_rows=tile_rows, needs_mask=needs_mask)

        inter_parts, total_parts = pl.pallas_call(
            kernel,
            out_shape=(
                jax.ShapeDtypeStruct((num_cores, 8, LANES), jnp.float32),
                jax.ShapeDtypeStruct((num_cores, 8, LANES), jnp.float32),
            ),
            grid_spec=pltpu.PrefetchScalarGridSpec(
                num_scalar_prefetch=0,
                grid=(num_cores, tiles_per_core),
                in_specs=[
                    pl.BlockSpec((tile_rows, LANES), in_index_map),
                    pl.BlockSpec((tile_rows, LANES), in_index_map),
                ],
                out_specs=(
                    pl.BlockSpec((1, 8, LANES), out_index_map),
                    pl.BlockSpec((1, 8, LANES), out_index_map),
                ),
            ),
            compiler_params=pltpu.CompilerParams(
                dimension_semantics=("parallel", "arbitrary"),
                vmem_limit_bytes=32 * 1024 * 1024),
        )(x2, t2)

        # Tiny final reduction (num_cores * 8 * 128 f32 values) + scalar
        # combine keeps `smooth` out of the kernel.
        inter = inter + jnp.sum(inter_parts)
        total = total + jnp.sum(total_parts)

    union = total - inter
    return (1.0 - (inter + smooth) / (union + smooth)).astype(jnp.float32)


def iou_loss_ref(inputs, targets, smooth=1.0):
    s = jax.nn.sigmoid(inputs.astype(jnp.float32)).ravel()
    t = targets.astype(jnp.float32).ravel()
    inter = jnp.sum(s * t)
    total = jnp.sum(s + t)
    union = total - inter
    return 1.0 - (inter + smooth) / (union + smooth)


if __name__ == "__main__":
    key = jax.random.PRNGKey(0)
    k1, k2 = jax.random.split(key)
    # NCHW, as the PyTorch module would receive (segmentation logits / masks).
    x = jax.random.normal(k1, (2, 4, 16, 16), dtype=jnp.float32)
    t = (jax.random.uniform(k2, (2, 4, 16, 16)) > 0.5).astype(jnp.float32)

    loss = jax.block_until_ready(iou_loss(x, t, smooth=1.0))
    ref = jax.block_until_ready(iou_loss_ref(x, t, smooth=1.0))

    assert jnp.allclose(loss, ref, rtol=1e-4, atol=1e-5), (loss, ref)
    print("KERNEL_OK")
</pallas_src>

<mosaic_0001>
module attributes {stable_mosaic.version = 11 : i64} {
  func.func @_iou_kernel(%arg0: i32, %arg1: i32, %arg2: memref<16x128xf32, #tpu.memory_space<vmem>>, %arg3: memref<16x128xf32, #tpu.memory_space<vmem>>, %arg4: memref<1x8x128xf32, #tpu.memory_space<vmem>>, %arg5: memref<1x8x128xf32, #tpu.memory_space<vmem>>) attributes {dimension_semantics = [#tpu.dimension_semantics<parallel>, #tpu.dimension_semantics<arbitrary>], iteration_bounds = array<i64: 1, 1>, scalar_prefetch = 0 : i64, scratch_operands = 0 : i64, tpu.core_type = #tpu.core_type<tc>, window_params = [{transform_indices = @transform_0, window_bounds = array<i64: 16, 128>}, {transform_indices = @transform_1, window_bounds = array<i64: 16, 128>}, {transform_indices = @transform_2, window_bounds = array<i64: 1, 8, 128>}, {transform_indices = @transform_3, window_bounds = array<i64: 1, 8, 128>}]} {
    %c0_i32 = arith.constant 0 : i32
    %0 = arith.cmpi eq, %arg1, %c0_i32 : i32
    %1 = arith.extui %0 : i1 to i32
    %c0_i32_0 = arith.constant 0 : i32
    %2 = arith.cmpi ne, %1, %c0_i32_0 : i32
    scf.if %2 {
      %cst_20 = arith.constant 0.000000e+00 : f32
      %30 = vector.broadcast %cst_20 : f32 to vector<1x8x128xf32>
      %c0_21 = arith.constant 0 : index
      %c0_22 = arith.constant 0 : index
      %c0_23 = arith.constant 0 : index
      %31 = vector.load %arg4[%c0_21, %c0_22, %c0_23] : memref<1x8x128xf32, #tpu.memory_space<vmem>>, vector<1x8x128xf32>
      tpu.vector_store %arg4[%c0_21, %c0_22, %c0_23], %30 {strides = array<i32>} : memref<1x8x128xf32, #tpu.memory_space<vmem>>, vector<1x8x128xf32>,
      %cst_24 = arith.constant 0.000000e+00 : f32
      %32 = vector.broadcast %cst_24 : f32 to vector<1x8x128xf32>
      %c0_25 = arith.constant 0 : index
      %c0_26 = arith.constant 0 : index
      %c0_27 = arith.constant 0 : index
      %33 = vector.load %arg5[%c0_25, %c0_26, %c0_27] : memref<1x8x128xf32, #tpu.memory_space<vmem>>, vector<1x8x128xf32>
      tpu.vector_store %arg5[%c0_25, %c0_26, %c0_27], %32 {strides = array<i32>} : memref<1x8x128xf32, #tpu.memory_space<vmem>>, vector<1x8x128xf32>,
    } else {
    }
    %c0 = arith.constant 0 : index
    %c0_1 = arith.constant 0 : index
    %3 = vector.load %arg2[%c0, %c0_1] : memref<16x128xf32, #tpu.memory_space<vmem>>, vector<16x128xf32>
    %c0_2 = arith.constant 0 : index
    %c0_3 = arith.constant 0 : index
    %4 = vector.load %arg3[%c0_2, %c0_3] : memref<16x128xf32, #tpu.memory_space<vmem>>, vector<16x128xf32>
    %cst = arith.constant 5.000000e-01 : f32
    %5 = vector.broadcast %cst : f32 to vector<16x128xf32>
    %6 = arith.mulf %5, %3 : vector<16x128xf32>
    %7 = math.tanh %6 : vector<16x128xf32>
    %cst_4 = arith.constant 1.000000e+00 : f32
    %8 = vector.broadcast %cst_4 : f32 to vector<16x128xf32>
    %9 = arith.addf %7, %8 : vector<16x128xf32>
    %cst_5 = arith.constant 5.000000e-01 : f32
    %10 = vector.broadcast %cst_5 : f32 to vector<16x128xf32>
    %11 = arith.mulf %10, %9 : vector<16x128xf32>
    %12 = arith.mulf %11, %4 : vector<16x128xf32>
    %13 = arith.addf %11, %4 : vector<16x128xf32>
    %c0_6 = arith.constant 0 : index
    %c0_7 = arith.constant 0 : index
    %c0_8 = arith.constant 0 : index
    %14 = vector.load %arg4[%c0_6, %c0_7, %c0_8] : memref<1x8x128xf32, #tpu.memory_space<vmem>>, vector<1x8x128xf32>
    %15 = vector.shape_cast %14 : vector<1x8x128xf32> to vector<8x128xf32>
    %16 = vector.shape_cast %12 : vector<16x128xf32> to vector<2x8x128xf32>
    %cst_9 = arith.constant dense<0.000000e+00> : vector<8x128xf32>
    %17 = vector.multi_reduction <add>, %16, %cst_9 [0] : vector<2x8x128xf32> to vector<8x128xf32>
    %18 = arith.addf %15, %17 : vector<8x128xf32>
    %c0_10 = arith.constant 0 : index
    %c0_11 = arith.constant 0 : index
    %c0_12 = arith.constant 0 : index
    %19 = vector.load %arg4[%c0_10, %c0_11, %c0_12] : memref<1x8x128xf32, #tpu.memory_space<vmem>>, vector<1x8x128xf32>
    %20 = vector.shape_cast %19 : vector<1x8x128xf32> to vector<8x128xf32>
    %21 = vector.shape_cast %18 : vector<8x128xf32> to vector<1x8x128xf32>
    tpu.vector_store %arg4[%c0_10, %c0_11, %c0_12], %21 {strides = array<i32>} : memref<1x8x128xf32, #tpu.memory_space<vmem>>, vector<1x8x128xf32>,
    %c0_13 = arith.constant 0 : index
    %c0_14 = arith.constant 0 : index
    %c0_15 = arith.constant 0 : index
    %22 = vector.load %arg5[%c0_13, %c0_14, %c0_15] : memref<1x8x128xf32, #tpu.memory_space<vmem>>, vector<1x8x128xf32>
    %23 = vector.shape_cast %22 : vector<1x8x128xf32> to vector<8x128xf32>
    %24 = vector.shape_cast %13 : vector<16x128xf32> to vector<2x8x128xf32>
    %cst_16 = arith.constant dense<0.000000e+00> : vector<8x128xf32>
    %25 = vector.multi_reduction <add>, %24, %cst_16 [0] : vector<2x8x128xf32> to vector<8x128xf32>
    %26 = arith.addf %23, %25 : vector<8x128xf32>
    %c0_17 = arith.constant 0 : index
    %c0_18 = arith.constant 0 : index
    %c0_19 = arith.constant 0 : index
    %27 = vector.load %arg5[%c0_17, %c0_18, %c0_19] : memref<1x8x128xf32, #tpu.memory_space<vmem>>, vector<1x8x128xf32>
    %28 = vector.shape_cast %27 : vector<1x8x128xf32> to vector<8x128xf32>
    %29 = vector.shape_cast %26 : vector<8x128xf32> to vector<1x8x128xf32>
    tpu.vector_store %arg5[%c0_17, %c0_18, %c0_19], %29 {strides = array<i32>} : memref<1x8x128xf32, #tpu.memory_space<vmem>>, vector<1x8x128xf32>,
    return
  }
  func.func @transform_0(%arg0: i32, %arg1: i32) -> (i32, i32) {
    %c1_i32 = arith.constant 1 : i32
    %0 = arith.muli %arg0, %c1_i32 : i32
    %1 = arith.addi %0, %arg1 : i32
    %c0_i32 = arith.constant 0 : i32
    %2 = arith.minsi %1, %c0_i32 : i32
    %c0_i32_0 = arith.constant 0 : i32
    %c0_i32_1 = arith.constant 0 : i32
    return %2, %c0_i32_0 : i32, i32
  }
  func.func @transform_1(%arg0: i32, %arg1: i32) -> (i32, i32) {
    %c1_i32 = arith.constant 1 : i32
    %0 = arith.muli %arg0, %c1_i32 : i32
    %1 = arith.addi %0, %arg1 : i32
    %c0_i32 = arith.constant 0 : i32
    %2 = arith.minsi %1, %c0_i32 : i32
    %c0_i32_0 = arith.constant 0 : i32
    %c0_i32_1 = arith.constant 0 : i32
    return %2, %c0_i32_0 : i32, i32
  }
  func.func @transform_2(%arg0: i32, %arg1: i32) -> (i32, i32, i32) {
    %c0_i32 = arith.constant 0 : i32
    %c0_i32_0 = arith.constant 0 : i32
    %c0_i32_1 = arith.constant 0 : i32
    return %arg0, %c0_i32, %c0_i32_0 : i32, i32, i32
  }
  func.func @transform_3(%arg0: i32, %arg1: i32) -> (i32, i32, i32) {
    %c0_i32 = arith.constant 0 : i32
    %c0_i32_0 = arith.constant 0 : i32
    %c0_i32_1 = arith.constant 0 : i32
    return %arg0, %c0_i32, %c0_i32_0 : i32, i32, i32
  }
}

</mosaic_0001>

<bundles_post_ra>
// kernel: tpu_custom_call.1
= control target key start
LH: loop header
LB: loop body
LE: loop exit
PB: predicated region body
PF: predicated region fallthrough
CT: control target
= control target key end

     0   :  { %9 = vsyncpa [#allocation3], 0  ;;  %s308_s0 = inlined_call_operand.hbm [shape: f32[16,128], index: 0, kind: input, shape index: {}]   ;;  %s309_s1 = inlined_call_operand.hbm [shape: f32[16,128], index: 1, kind: input, shape index: {}]   ;;  %s310_s2 = inlined_call_operand.hbm [shape: f32[1,8,128], index: 2, kind: output, shape index: {0}]   ;;  %s311_s3 = inlined_call_operand.hbm [shape: f32[1,8,128], index: 3, kind: output, shape index: {1}]  }
   0x1   :  { %10 = vsyncpa [#allocation6], 0 }
   0x2   :  { %11 = vsyncpa [#allocation4], 0 }
   0x3   :  { %12 = vsyncpa [#allocation9], 0  ;;  %s234_s12 = smov [#allocation2]   ;;  %s138_s16 = scalar_lea.hbm %s308_s0, 256 }
   0x4   :  { %s24_s13 = sshll.u32 %s234_s12, 4  ;;  %p139_p0 = scmp.ne.s32.totalorder %s308_s0, %s138_s16  ;;  %s25_s13 = int_to_ptr.vmem [resolvable:$true] %s24_s13 }
   0x5   :  { %p142_p1 = scmp.lt.u32.totalorder %s138_s16, %s308_s0 }
   0x7   :  { %p144_p2 = pnand %p142_p1, %p139_p0 }
   0x9   :  { %147 = shalt.err (!%p144_p2)
}
   0xa   :  { %s148_s21 = scalar_lea.vmem %s25_s13, 256  ;;  %p153_p4 = scmp.lt.s32.totalorder %s25_s13, %s25_s13 }
   0xb   :  { %p149_p3 = scmp.ne.s32.totalorder %s25_s13, %s148_s21  ;;  %p154_p5 = scmp.lt.s32.totalorder %s148_s21, %s148_s21 }
   0xd   :  { %p155_p6 = por %p154_p5, %p153_p4 }
   0xf   :  { %p156_p7 = pnand %p155_p6, %p149_p3 }
  0x11   :  { %159 = shalt.err (!%p156_p7)
}
  0x12   :  { %s235_s22 = smov 128   ;;  %s236_s23 = smov 8  }
  0x13   :  { %30 = dma.hbm_to_vmem [thread:$0]  %s308_s0, 256, %s25_s13, [#allocation3], %s235_s22, %s235_s22, %s236_s23  }
  0x14   :  { %s237_s26 = smov [#allocation5]   ;;  %s160_s30 = scalar_lea.hbm %s309_s1, 256 }
  0x15   :  { %s42_s27 = sshll.u32 %s237_s26, 4  ;;  %p161_p8 = scmp.ne.s32.totalorder %s309_s1, %s160_s30  ;;  %s43_s27 = int_to_ptr.vmem [resolvable:$true] %s42_s27 }
  0x16   :  { %p164_p9 = scmp.lt.u32.totalorder %s160_s30, %s309_s1 }
  0x18   :  { %p166_p10 = pnand %p164_p9, %p161_p8 }
  0x1a   :  { %169 = shalt.err (!%p166_p10)
}
  0x1b   :  { %s170_s8 = scalar_lea.vmem %s43_s27, 256  ;;  %p175_p12 = scmp.lt.s32.totalorder %s43_s27, %s43_s27 }
  0x1c   :  { %p171_p11 = scmp.ne.s32.totalorder %s43_s27, %s170_s8  ;;  %p176_p13 = scmp.lt.s32.totalorder %s170_s8, %s170_s8 }
  0x1e   :  { %p177_p0 = por %p176_p13, %p175_p12 }
  0x20   :  { %p178_p1 = pnand %p177_p0, %p171_p11 }
  0x22   :  { %181 = shalt.err (!%p178_p1)
}
  0x23   :  { %48 = dma.hbm_to_vmem [thread:$0]  %s309_s1, 256, %s43_s27, [#allocation6], %s235_s22, %s235_s22, %s236_s23  }
  0x24   :  { %226 = dma.done.wait [#allocation3], 256  }
  0x25   :  { %227 = vsyncadd [#allocation3], 4294967040 }
  0x26   :  { %228 = dma.done.wait [#allocation6], 256  }
  0x27   :  { %229 = vsyncadd [#allocation6], 4294967040  ;;  %v69_v0 = vld [vmem:[#allocation2] sm:$0xff]  ;;  %v70_v1 = vld [vmem:[#allocation2 + $0x8] sm:$0xff]  ;;  %s238_s1 = smov [#allocation7]   ;;  %s239_s11 = smov [#allocation8]  }
  0x28   :  { %v73_v2 = vmul.f32 0.5, %v69_v0  ;;  %v74_v3 = vmul.f32 0.5, %v70_v1  ;;  %v71_v7 = vld [vmem:[#allocation5] sm:$0xff]  ;;  %v72_v9 = vld [vmem:[#allocation5 + $0x8] sm:$0xff]  ;;  %s99_s10 = sshll.u32 %s238_s1, 4  ;;  %s109_s12 = sshll.u32 %s239_s11, 4  ;;  %s100_s10 = int_to_ptr.vmem [resolvable:$true] %s99_s10  ;;  %s110_s12 = int_to_ptr.vmem [resolvable:$true] %s109_s12 }
  0x29   :  { %s182_s13 = scalar_lea.vmem %s100_s10, 128  ;;  %p187_p3 = scmp.lt.s32.totalorder %s100_s10, %s100_s10 }
  0x2a   :  { %134 = vtanh.f32 %v73_v2  ;;  %p183_p2 = scmp.ne.s32.totalorder %s100_s10, %s182_s13  ;;  %p188_p4 = scmp.lt.s32.totalorder %s182_s13, %s182_s13 }
  0x2b   :  { %136 = vtanh.f32 %v74_v3 }
  0x2c   :  { %p189_p5 = por %p188_p4, %p187_p3 }
  0x2e   :  { %p190_p6 = pnand %p189_p5, %p183_p2 }
  0x34   :  { %v135_v4 = vpop.eup %134 }
  0x35   :  { %v137_v5 = vpop.eup %136  ;;  %v77_v6 = vadd.f32 1.0, %v135_v4 }
  0x36   :  { %v78_v8 = vadd.f32 1.0, %v137_v5 }
  0x37   :  { %v79_v10 = vmul.f32 0.5, %v77_v6 }
  0x38   :  { %v80_v11 = vmul.f32 0.5, %v78_v8 }
  0x39   :  { %v81_v12 = vmul.f32 %v79_v10, %v71_v7  ;;  %v83_v13 = vadd.f32 %v79_v10, %v71_v7 }
  0x3a   :  { %v82_v14 = vmul.f32 %v80_v11, %v72_v9  ;;  %v84_v15 = vadd.f32 %v80_v11, %v72_v9 }
  0x3c   :  { %v86_v16 = vadd.f32 %v82_v14, %v81_v12  ;;  %v90_v17 = vadd.f32 %v84_v15, %v83_v13 }
  0x3e   :  { %88 = vst [vmem:[#allocation7] sm:$0xff] %v86_v16  ;;  %92 = vst [vmem:[#allocation8] sm:$0xff] %v90_v17 }
  0x3f   :  { %193 = shalt.err (!%p190_p6)
}
  0x40   :  { %s194_s16 = scalar_lea.hbm %s310_s2, 128 }
  0x41   :  { %p195_p7 = scmp.ne.s32.totalorder %s310_s2, %s194_s16  ;;  %p198_p8 = scmp.lt.u32.totalorder %s194_s16, %s310_s2 }
  0x43   :  { %p200_p9 = pnand %p198_p8, %p195_p7 }
  0x45   :  { %203 = shalt.err (!%p200_p9)
}
  0x46   :  { %102 = dma.vmem_to_hbm [thread:$0]  %s100_s10, 128, %s310_s2, [#allocation4]  }
  0x47   :  { %s204_s23 = scalar_lea.vmem %s110_s12, 128  ;;  %p209_p11 = scmp.lt.s32.totalorder %s110_s12, %s110_s12 }
  0x48   :  { %p205_p10 = scmp.ne.s32.totalorder %s110_s12, %s204_s23  ;;  %p210_p12 = scmp.lt.s32.totalorder %s204_s23, %s204_s23 }
  0x4a   :  { %p211_p13 = por %p210_p12, %p209_p11 }
  0x4c   :  { %p212_p0 = pnand %p211_p13, %p205_p10 }
  0x4e   :  { %215 = shalt.err (!%p212_p0)
}
  0x4f   :  { %s216_s26 = scalar_lea.hbm %s311_s3, 128 }
  0x50   :  { %p217_p1 = scmp.ne.s32.totalorder %s311_s3, %s216_s26  ;;  %p220_p2 = scmp.lt.u32.totalorder %s216_s26, %s311_s3 }
  0x52   :  { %p222_p3 = pnand %p220_p2, %p217_p1 }
  0x54   :  { %225 = shalt.err (!%p222_p3)
}
  0x55   :  { %112 = dma.vmem_to_hbm [thread:$0]  %s110_s12, 128, %s311_s3, [#allocation9]  }
  0x56   :  { %230 = dma.done.wait [#allocation4], 128  }
  0x57   :  { %231 = vsyncadd [#allocation4], 4294967168 }
  0x58   :  { %232 = dma.done.wait [#allocation9], 128  }
  0x59   :  { %233 = vsyncadd [#allocation9], 4294967168 }
  0x5a   :  { %119 = vsyncpa [#allocation3], 1 }
  0x5b   :  { %120 = vsyncpa [#allocation6], 1 }
  0x5c   :  { %121 = vsyncpa [#allocation4], 1 }
  0x5d   :  { %122 = vsyncpa [#allocation9], 1 }

</bundles_post_ra>
